<compile_context>
chip_gen: v7x
topology: tpu7x:2x2x1
jax: 0.10.0
libtpu: 0.0.40
codegen_flags: <defaults>
</compile_context>

<pallas_src>
import functools

import jax
import jax.numpy as jnp
from jax.experimental import pallas as pl
from jax.experimental.pallas import tpu as pltpu


# --------------------------------------------------------------------------
# Forward:  pred = nonlin(prev) @ Wr_t          (Wr_t already (in, out))
# --------------------------------------------------------------------------
def _tpc_forward_kernel(prev_ref, wr_ref, pred_ref, *, nonlin):
    x = prev_ref[...].astype(jnp.float32)
    if nonlin == "tanh":
        x = jnp.tanh(x)          # EUP slot; f32 keeps bit-accuracy vs. reference
    # nonlin == "linear": identity, nothing to do.
    pred = jnp.dot(x, wr_ref[...], preferred_element_type=jnp.float32)
    pred_ref[...] = pred.astype(pred_ref.dtype)


def _pick_batch_tile(B, max_tile=256):
    """Largest sublane-aligned tile that divides B; fall back to full batch."""
    tb = max_tile
    while tb >= 8:
        if B % tb == 0:
            return tb
        tb //= 2
    return B  # block == full array is always a legal BlockSpec


def single_layer_tpc_forward(prev, wr_t, *, nonlin="tanh"):
    """prev: (B, D) activations.
    wr_t: (D, D) weight ALREADY in (in, out) layout, i.e. torch `Wr.weight.T`,
    transposed ONCE at parameter-initialization time (not per call).
    Returns pred = nonlin(prev) @ wr_t  ==  torch `self.Wr(self.nonlin(prev))`.
    """
    B, D = prev.shape
    assert wr_t.shape == (D, D)
    assert nonlin in ("tanh", "linear")

    tb = _pick_batch_tile(B)
    grid = (B // tb,)

    kernel = functools.partial(_tpc_forward_kernel, nonlin=nonlin)

    cost = pl.CostEstimate(
        flops=2 * B * D * D,
        transcendentals=B * D if nonlin == "tanh" else 0,
        bytes_accessed=(prev.size + wr_t.size + B * D) * 4,
    )

    return pl.pallas_call(
        kernel,
        out_shape=jax.ShapeDtypeStruct((B, D), prev.dtype),
        grid_spec=pltpu.PrefetchScalarGridSpec(
            num_scalar_prefetch=0,
            grid=grid,
            in_specs=[
                # Stream batch tiles of the activations.
                pl.BlockSpec((tb, D), lambda i: (i, 0)),
                # Constant block index -> Wr stays resident in VMEM (one DMA).
                pl.BlockSpec((D, D), lambda i: (0, 0)),
            ],
            out_specs=pl.BlockSpec((tb, D), lambda i: (i, 0)),
        ),
        compiler_params=pltpu.CompilerParams(
            # Independent batch tiles: shard across the 2 TCs on v7x
            # (no-op on v5e/v6e which have a single TensorCore).
            dimension_semantics=("parallel",),
        ),
        cost_estimate=cost,
    )(prev, wr_t)


def single_layer_tpc_forward_seq(x_seq, wr_t, *, nonlin="tanh"):
    """Fused rollout: apply forward to every timestep of x_seq (T, B, D) with a
    single pallas_call / single weight fetch, by folding time into the batch
    axis (the module's forward has no cross-step state, so this is exact)."""
    T, B, D = x_seq.shape
    flat = x_seq.reshape(T * B, D)
    pred = single_layer_tpc_forward(flat, wr_t, nonlin=nonlin)
    return pred.reshape(T, B, D)


# --------------------------------------------------------------------------
# Fused update_errs + get_energy:
#   err = curr - nonlin(prev) @ Wr_t ;  energy = sum(err ** 2)
# --------------------------------------------------------------------------
def _tpc_energy_kernel(curr_ref, prev_ref, wr_ref, err_ref, energy_ref,
                       acc_ref, *, nonlin):
    i = pl.program_id(0)

    @pl.when(i == 0)
    def _():
        acc_ref[...] = jnp.zeros_like(acc_ref)

    x = prev_ref[...].astype(jnp.float32)
    if nonlin == "tanh":
        x = jnp.tanh(x)
    pred = jnp.dot(x, wr_ref[...], preferred_element_type=jnp.float32)
    err = curr_ref[...].astype(jnp.float32) - pred
    err_ref[...] = err.astype(err_ref.dtype)
    acc_ref[...] = acc_ref[...] + jnp.sum(err * err)

    @pl.when(i == pl.num_programs(0) - 1)
    def _():
        energy_ref[...] = acc_ref[...]


def single_layer_tpc_energy(curr, prev, wr_t, *, nonlin="tanh"):
    """Returns (err, energy) matching update_errs / get_energy, fused in one
    pass (pred never goes back to HBM)."""
    B, D = prev.shape
    assert curr.shape == (B, D) and wr_t.shape == (D, D)
    assert nonlin in ("tanh", "linear")

    tb = _pick_batch_tile(B)
    grid = (B // tb,)

    kernel = functools.partial(_tpc_energy_kernel, nonlin=nonlin)

    err, energy = pl.pallas_call(
        kernel,
        out_shape=(
            jax.ShapeDtypeStruct((B, D), prev.dtype),
            jax.ShapeDtypeStruct((1, 1), jnp.float32),
        ),
        grid_spec=pltpu.PrefetchScalarGridSpec(
            num_scalar_prefetch=0,
            grid=grid,
            in_specs=[
                pl.BlockSpec((tb, D), lambda i: (i, 0)),   # curr tiles
                pl.BlockSpec((tb, D), lambda i: (i, 0)),   # prev tiles
                pl.BlockSpec((D, D), lambda i: (0, 0)),    # Wr resident
            ],
            out_specs=[
                pl.BlockSpec((tb, D), lambda i: (i, 0)),   # err tiles
                pl.BlockSpec((1, 1), lambda i: (0, 0)),    # scalar energy
            ],
            scratch_shapes=[pltpu.VMEM((1, 1), jnp.float32)],
        ),
        compiler_params=pltpu.CompilerParams(
            # Sequential accumulation of the scalar energy across batch tiles.
            dimension_semantics=("arbitrary",),
        ),
    )(curr, prev, wr_t)
    return err, energy[0, 0]


# --------------------------------------------------------------------------
# Pure-JAX reference matching the PyTorch module (wr_w in torch (out, in)).
# --------------------------------------------------------------------------
def _ref_forward(prev, wr_w, nonlin="tanh"):
    x = jnp.tanh(prev) if nonlin == "tanh" else prev
    return x @ wr_w.T


if __name__ == "__main__":
    # Small shapes consistent with the module; input_size chosen lane-dense
    # (multiple of 128) per the perf guidance.
    batch, input_size, seq_len = 16, 128, 8

    key = jax.random.PRNGKey(0)
    k_prev, k_w, k_seq = jax.random.split(key, 3)

    prev = jax.random.normal(k_prev, (batch, input_size), dtype=jnp.float32)
    x_seq = jax.random.normal(k_seq, (seq_len, batch, input_size),
                              dtype=jnp.float32)

    # Deterministic "kaiming-uniform-like" init for Wr in torch layout (out, in):
    bound = 1.0 / jnp.sqrt(jnp.float32(input_size))
    wr_w = jax.random.uniform(k_w, (input_size, input_size), jnp.float32,
                              -bound, bound)

    # Parameter layout conversion done ONCE at init (not inside the forward):
    wr_t = jnp.asarray(wr_w.T)   # (in, out)

    # --- single-step forward (tanh nonlinearity) ---
    pred = single_layer_tpc_forward(prev, wr_t, nonlin="tanh")
    jax.block_until_ready(pred)
    ref = _ref_forward(prev, wr_w, nonlin="tanh")
    assert pred.shape == (batch, input_size)
    assert jnp.allclose(pred, ref, atol=1e-5, rtol=1e-5)

    # --- single-step forward (linear nonlinearity) ---
    pred_lin = single_layer_tpc_forward(prev, wr_t, nonlin="linear")
    jax.block_until_ready(pred_lin)
    ref_lin = _ref_forward(prev, wr_w, nonlin="linear")
    assert jnp.allclose(pred_lin, ref_lin, atol=1e-5, rtol=1e-5)

    # --- fused T-step rollout in one pallas_call ---
    pred_seq = single_layer_tpc_forward_seq(x_seq, wr_t, nonlin="tanh")
    jax.block_until_ready(pred_seq)
    ref_seq = jnp.stack([_ref_forward(x_seq[t], wr_w) for t in range(seq_len)])
    assert pred_seq.shape == (seq_len, batch, input_size)
    assert jnp.allclose(pred_seq, ref_seq, atol=1e-5, rtol=1e-5)

    # --- fused update_errs + get_energy kernel ---
    err, energy = single_layer_tpc_energy(x_seq[1], x_seq[0], wr_t,
                                          nonlin="tanh")
    jax.block_until_ready(energy)
    ref_err = x_seq[1] - _ref_forward(x_seq[0], wr_w)
    ref_energy = jnp.sum(ref_err ** 2)
    assert err.shape == (batch, input_size)
    assert jnp.allclose(err, ref_err, atol=1e-5, rtol=1e-5)
    assert jnp.allclose(energy, ref_energy, atol=1e-3, rtol=1e-5)

    print("KERNEL_OK")
</pallas_src>

<mosaic_0001>
module attributes {stable_mosaic.version = 11 : i64} {
  func.func @_tpc_forward_kernel(%arg0: i32, %arg1: memref<16x128xf32, #tpu.memory_space<vmem>>, %arg2: memref<128x128xf32, #tpu.memory_space<vmem>>, %arg3: memref<16x128xf32, #tpu.memory_space<vmem>>) attributes {dimension_semantics = [#tpu.dimension_semantics<parallel>], iteration_bounds = array<i64: 1>, scalar_prefetch = 0 : i64, scratch_operands = 0 : i64, tpu.core_type = #tpu.core_type<tc>, window_params = [{transform_indices = @transform_0, window_bounds = array<i64: 16, 128>}, {pipeline_mode = #tpu.pipeline_mode<synchronous>, transform_indices = @transform_1, window_bounds = array<i64: 128, 128>}, {transform_indices = @transform_2, window_bounds = array<i64: 16, 128>}]} {
    %c0 = arith.constant 0 : index
    %c0_0 = arith.constant 0 : index
    %0 = vector.load %arg1[%c0, %c0_0] : memref<16x128xf32, #tpu.memory_space<vmem>>, vector<16x128xf32>
    %1 = math.tanh %0 : vector<16x128xf32>
    %c0_1 = arith.constant 0 : index
    %c0_2 = arith.constant 0 : index
    %2 = vector.load %arg2[%c0_1, %c0_2] : memref<128x128xf32, #tpu.memory_space<vmem>>, vector<128x128xf32>
    %cst = arith.constant dense<0.000000e+00> : vector<16x128xf32>
    %3 = tpu.matmul %1, %2, %cst {dimension_numbers = #tpu.dot_dimension_numbers<[1], [0], [0], [1], [0, 0, 1, 1], [], []>} : vector<16x128xf32>, vector<128x128xf32>, vector<16x128xf32> -> vector<16x128xf32>
    %c0_3 = arith.constant 0 : index
    %c0_4 = arith.constant 0 : index
    %4 = vector.load %arg3[%c0_3, %c0_4] : memref<16x128xf32, #tpu.memory_space<vmem>>, vector<16x128xf32>
    tpu.vector_store %arg3[%c0_3, %c0_4], %3 {strides = array<i32>} : memref<16x128xf32, #tpu.memory_space<vmem>>, vector<16x128xf32>,
    return
  }
  func.func @transform_0(%arg0: i32) -> (i32, i32) {
    %c0_i32 = arith.constant 0 : i32
    %c0_i32_0 = arith.constant 0 : i32
    return %arg0, %c0_i32 : i32, i32
  }
  func.func @transform_1(%arg0: i32) -> (i32, i32) {
    %c0_i32 = arith.constant 0 : i32
    %c0_i32_0 = arith.constant 0 : i32
    %c0_i32_1 = arith.constant 0 : i32
    return %c0_i32, %c0_i32_0 : i32, i32
  }
  func.func @transform_2(%arg0: i32) -> (i32, i32) {
    %c0_i32 = arith.constant 0 : i32
    %c0_i32_0 = arith.constant 0 : i32
    return %arg0, %c0_i32 : i32, i32
  }
}

</mosaic_0001>

<bundles_post_ra>
// kernel: tpu_custom_call.1
= control target key start
LH: loop header
LB: loop body
LE: loop exit
PB: predicated region body
PF: predicated region fallthrough
CT: control target
= control target key end

     0   :  { %7 = vsyncpa [#allocation3], 0  ;;  %s386_s0 = inlined_call_operand.hbm [shape: f32[16,128], index: 0, kind: input, shape index: {}]   ;;  %s387_s1 = inlined_call_operand.hbm [shape: f32[128,128], index: 1, kind: input, shape index: {}]   ;;  %s388_s2 = inlined_call_operand.hbm [shape: f32[16,128], index: 2, kind: output, shape index: {}]  }
   0x1   :  { %8 = vsyncpa [#allocation6], 0 }
   0x2   :  { %9 = vsyncpa [#allocation4], 0  ;;  %s321_s9 = smov [#allocation2]   ;;  %s249_s13 = scalar_lea.hbm %s386_s0, 256 }
   0x3   :  { %s15_s10 = sshll.u32 %s321_s9, 4  ;;  %p250_p0 = scmp.ne.s32.totalorder %s386_s0, %s249_s13  ;;  %s16_s10 = int_to_ptr.vmem [resolvable:$true] %s15_s10 }
   0x4   :  { %p253_p1 = scmp.lt.u32.totalorder %s249_s13, %s386_s0 }
   0x6   :  { %p255_p2 = pnand %p253_p1, %p250_p0 }
   0x8   :  { %258 = shalt.err (!%p255_p2)
}
   0x9   :  { %s259_s18 = scalar_lea.vmem %s16_s10, 256  ;;  %p264_p4 = scmp.lt.s32.totalorder %s16_s10, %s16_s10 }
   0xa   :  { %p260_p3 = scmp.ne.s32.totalorder %s16_s10, %s259_s18  ;;  %p265_p5 = scmp.lt.s32.totalorder %s259_s18, %s259_s18 }
   0xc   :  { %p266_p6 = por %p265_p5, %p264_p4 }
   0xe   :  { %p267_p7 = pnand %p266_p6, %p260_p3 }
  0x10   :  { %270 = shalt.err (!%p267_p7)
}
  0x11   :  { %s322_s19 = smov 128   ;;  %s323_s20 = smov 8  }
  0x12   :  { %21 = dma.hbm_to_vmem [thread:$0]  %s386_s0, 256, %s16_s10, [#allocation3], %s322_s19, %s322_s19, %s323_s20  }
  0x13   :  { %s324_s23 = smov [#allocation5]   ;;  %s271_s27 = scalar_lea.hbm %s387_s1, 2048 }
  0x14   :  { %s27_s24 = sshll.u32 %s324_s23, 4  ;;  %p272_p8 = scmp.ne.s32.totalorder %s387_s1, %s271_s27  ;;  %s28_s24 = int_to_ptr.vmem [resolvable:$true] %s27_s24 }
  0x15   :  { %p275_p9 = scmp.lt.u32.totalorder %s271_s27, %s387_s1 }
  0x17   :  { %p277_p10 = pnand %p275_p9, %p272_p8 }
  0x19   :  { %280 = shalt.err (!%p277_p10)
}
  0x1a   :  { %s281_s4 = scalar_lea.vmem %s28_s24, 2048  ;;  %p286_p12 = scmp.lt.s32.totalorder %s28_s24, %s28_s24 }
  0x1b   :  { %p282_p11 = scmp.ne.s32.totalorder %s28_s24, %s281_s4  ;;  %p287_p13 = scmp.lt.s32.totalorder %s281_s4, %s281_s4 }
  0x1d   :  { %p288_p0 = por %p287_p13, %p286_p12 }
  0x1f   :  { %p289_p1 = pnand %p288_p0, %p282_p11 }
  0x21   :  { %292 = shalt.err (!%p289_p1)
}
  0x22   :  { %33 = dma.hbm_to_vmem [thread:$0]  %s387_s1, 2048, %s28_s24, [#allocation6], %s322_s19, %s322_s19, %s323_s20  }
  0x23   :  { %315 = dma.done.wait [#allocation3], 256  }
  0x24   :  { %316 = vsyncadd [#allocation3], 4294967040 }
  0x25   :  { %317 = dma.done.wait [#allocation6], 2048  }
  0x26   :  { %318 = vsyncadd [#allocation6], 4294965248  ;;  %v44_v0 = vld [vmem:[#allocation5] sm:$0xff]  ;;  %v45_v1 = vld [vmem:[#allocation5 + $0x8] sm:$0xff]  ;;  %s325_s1 = smov [#allocation7]  }
  0x27   :  { %v46_v2 = vld [vmem:[#allocation5 + $0x10] sm:$0xff]  ;;  %v208_v3 = vpack.c.bf16 %v45_v1, %v44_v0  ;;  %v47_v4 = vld [vmem:[#allocation5 + $0x18] sm:$0xff]  ;;  %v48_v6 = vld [vmem:[#allocation5 + $0x20] sm:$0xff]  ;;  %s142_s6 = sshll.u32 %s325_s1, 4  ;;  %s143_s6 = int_to_ptr.vmem [resolvable:$true] %s142_s6 }
  0x28   :  { %v212_v5 = vpack.c.bf16 %v47_v4, %v46_v2  ;;  %v49_v7 = vld [vmem:[#allocation5 + $0x28] sm:$0xff]  ;;  %v40_v9 = vld [vmem:[#allocation2] sm:$0xff]  ;;  %v51_v11 = vld [vmem:[#allocation5 + $0x38] sm:$0xff]  ;;  %s293_s7 = scalar_lea.vmem %s143_s6, 256  ;;  %p298_p3 = scmp.lt.s32.totalorder %s143_s6, %s143_s6 }
  0x29   :  { %209 = vmatprep.subr.bf16.mxu0 %v208_v3  ;;  %v216_v8 = vpack.c.bf16 %v49_v7, %v48_v6  ;;  %v50_v10 = vld [vmem:[#allocation5 + $0x30] sm:$0xff]  ;;  %245 = vtanh.f32 %v40_v9  ;;  %v52_v13 = vld [vmem:[#allocation5 + $0x40] sm:$0xff]  ;;  %v53_v14 = vld [vmem:[#allocation5 + $0x48] sm:$0xff]  ;;  %p294_p2 = scmp.ne.s32.totalorder %s143_s6, %s293_s7  ;;  %p299_p4 = scmp.lt.s32.totalorder %s293_s7, %s293_s7 }
  0x2a   :  { %211 = vmatpush3.bf16.msra.mxu0 %v208_v3  ;;  %v220_v12 = vpack.c.bf16 %v51_v11, %v50_v10  ;;  %v224_v15 = vpack.c.bf16 %v53_v14, %v52_v13  ;;  %v54_v16 = vld [vmem:[#allocation5 + $0x50] sm:$0xff]  ;;  %v55_v17 = vld [vmem:[#allocation5 + $0x58] sm:$0xff]  ;;  %v56_v20 = vld [vmem:[#allocation5 + $0x60] sm:$0xff] }
  0x2b   :  { %213 = vmatprep.subr.bf16.mxu0 %v212_v5  ;;  %v228_v19 = vpack.c.bf16 %v55_v17, %v54_v16  ;;  %v57_v21 = vld [vmem:[#allocation5 + $0x68] sm:$0xff]  ;;  %v41_v22 = vld [vmem:[#allocation2 + $0x8] sm:$0xff]  ;;  %v58_v24 = vld [vmem:[#allocation5 + $0x70] sm:$0xff]  ;;  %p300_p5 = por %p299_p4, %p298_p3 }
  0x2c   :  { %v232_v23 = vpack.c.bf16 %v57_v21, %v56_v20  ;;  %v59_v25 = vld [vmem:[#allocation5 + $0x78] sm:$0xff]  ;;  %247 = vtanh.f32 %v41_v22 }
  0x2d   :  { %v236_v26 = vpack.c.bf16 %v59_v25, %v58_v24  ;;  %p301_p6 = pnand %p300_p5, %p294_p2 }
  0x2e   :  { %215 = vmatpush3.bf16.msra.mxu0 %v212_v5 }
  0x2f   :  { %217 = vmatprep.subr.bf16.mxu0 %v216_v8 }
  0x32   :  { %219 = vmatpush3.bf16.msra.mxu0 %v216_v8 }
  0x33   :  { %221 = vmatprep.subr.bf16.mxu0 %v220_v12  ;;  %v246_v18 = vpop.eup %245 }
  0x34   :  { %205 = vmatprep.mubr.f32.mxu0 %v246_v18 }
  0x36   :  { %223 = vmatpush3.bf16.msra.mxu0 %v220_v12  ;;  %v248_v27 = vpop.eup %247 }
  0x37   :  { %225 = vmatprep.subr.bf16.mxu0 %v224_v15 }
  0x3a   :  { %227 = vmatpush3.bf16.msra.mxu0 %v224_v15 }
  0x3b   :  { %229 = vmatprep.subr.bf16.mxu0 %v228_v19 }
  0x3e   :  { %231 = vmatpush3.bf16.msra.mxu0 %v228_v19 }
  0x3f   :  { %233 = vmatprep.subr.bf16.mxu0 %v232_v23 }
  0x42   :  { %235 = vmatpush3.bf16.msra.mxu0 %v232_v23 }
  0x43   :  { %237 = vmatprep.subr.bf16.mxu0 %v236_v26 }
  0x46   :  { %239 = vmatpush3.bf16.msra.mxu0 %v236_v26 }
  0x49   :  { %206 = vmatmul.mubr.f32.vlgmr.msra.gmra.mrb[0].mxu0 %v248_v27 }
 0x11c   :  { %v207_v28 = vpop.f32.mrb[0].mxu0 }
 0x11d   :  { %136 = vst [vmem:[#allocation7 + $0x8] sm:$0xff] %v207_v28  ;;  %v126_v29 = vpop.f32.mrb[1].mxu0 }
 0x11e   :  { %135 = vst [vmem:[#allocation7] sm:$0xff] %v126_v29 }
 0x11f   :  { %304 = shalt.err (!%p301_p6)
}
 0x120   :  { %s305_s10 = scalar_lea.hbm %s388_s2, 256 }
 0x121   :  { %p306_p7 = scmp.ne.s32.totalorder %s388_s2, %s305_s10  ;;  %p309_p8 = scmp.lt.u32.totalorder %s305_s10, %s388_s2 }
 0x123   :  { %p311_p9 = pnand %p309_p8, %p306_p7 }
 0x125   :  { %314 = shalt.err (!%p311_p9)
}
 0x126   :  { %148 = dma.vmem_to_hbm [thread:$0]  %s143_s6, 256, %s388_s2, [#allocation4], %s322_s19, %s322_s19, %s323_s20  }
 0x127   :  { %319 = dma.done.wait [#allocation4], 256  }
 0x128   :  { %320 = vsyncadd [#allocation4], 4294967040 }
 0x129   :  { %152 = vsyncpa [#allocation3], 1 }
 0x12a   :  { %153 = vsyncpa [#allocation6], 1 }
 0x12b   :  { %154 = vsyncpa [#allocation4], 1 }

</bundles_post_ra>
